<compile_context>
chip_gen: v7x
topology: tpu7x:2x2x1
jax: 0.10.0
libtpu: 0.0.40
codegen_flags: <defaults>
</compile_context>

<pallas_src>
import jax
import jax.numpy as jnp
from jax import lax
from jax.experimental import pallas as pl
from jax.experimental.pallas import tpu as pltpu

CONTEXT_DIM = 15
MARKET_DIM = 32
ROUTING_DIM = 16
STEALTH_DIM = 12
RLHF_DIM = 8
INTEL_DIM = STEALTH_DIM + RLHF_DIM                     # 20
GROUP_DIMS = (CONTEXT_DIM, MARKET_DIM, ROUTING_DIM, INTEL_DIM)
COMBINED_DIM = sum(GROUP_DIMS)                         # 83
HIDDEN_DIMS = (512, 256, 128, 64)
NUM_AGENTS = 5
LN_EPS = 1e-5

FEAT_DIM = HIDDEN_DIMS[-1]                             # 64
HEAD_SLAB = 128                                        # lane-dense output width
VALUE_LANE = FEAT_DIM                                  # 64
COORD_LO = FEAT_DIM + 1                                # 65
COORD_HI = COORD_LO + NUM_AGENTS                       # 70
CONF_LANE = COORD_HI                                   # 70
HEAD_PAD = HEAD_SLAB - (FEAT_DIM + 2 + NUM_AGENTS)     # 57


def _critic_kernel(
    x_ref,                       # [TB, 83] f32
    wc_ref, bc_ref,              # fused attention+fusion: [83,83], [1,83] f32
    w1_ref, p1_ref,              # MLP block 1: W (bf16), packed [b;gamma;beta] [3,H] f32
    w2_ref, p2_ref,
    w3_ref, p3_ref,
    w4_ref, p4_ref,
    wh_ref, bh_ref,              # fused heads: [64,128], [1,128] f32
    out_ref,                     # [TB, 128] f32
):
    x = x_ref[...]

    # attention + fusion + residual, collapsed to one matmul (exact for seq_len==1)
    h = x + jnp.dot(x, wc_ref[...], preferred_element_type=jnp.float32) + bc_ref[...]

    # --- MLP block: Linear -> ReLU -> LayerNorm (-> Dropout=identity, eval) ---
    # TODO(synk): nn.Dropout(0.1) is active in the torch module's train mode;
    # implemented here with eval (identity) semantics.
    def block(hin, w_ref, p_ref):
        z = jnp.dot(hin.astype(w_ref.dtype), w_ref[...],
                    preferred_element_type=jnp.float32)
        z = jnp.maximum(z + p_ref[0:1, :], 0.0)
        mean = jnp.mean(z, axis=-1, keepdims=True)
        var = jnp.mean(jnp.square(z - mean), axis=-1, keepdims=True)
        zn = (z - mean) * lax.rsqrt(var + LN_EPS)
        return zn * p_ref[1:2, :] + p_ref[2:3, :]

    h = block(h, w1_ref, p1_ref)     # [TB, 512]
    h = block(h, w2_ref, p2_ref)     # [TB, 256]
    h = block(h, w3_ref, p3_ref)     # [TB, 128]
    h = block(h, w4_ref, p4_ref)     # [TB, 64]

    # --- fused heads: one [64,128] matmul produces the whole output slab ---
    # lanes 0:64 = features (identity block), 64 = value, 65:70 = coord logits,
    # 70 = conflict logit, 71:128 = zero pad.
    o = jnp.dot(h, wh_ref[...], preferred_element_type=jnp.float32) + bh_ref[...]

    lane = lax.broadcasted_iota(jnp.int32, o.shape, 1)
    coord_mask = (lane >= COORD_LO) & (lane < COORD_HI)

    # masked, numerically-stabilized softmax over the 5 coordination lanes
    masked = jnp.where(coord_mask, o, -jnp.inf)
    mx = jnp.max(masked, axis=-1, keepdims=True)
    ex = jnp.exp(masked - mx)                       # zero outside coord lanes
    sm = ex * pl.reciprocal(jnp.sum(ex, axis=-1, keepdims=True), approx=True)

    sig = 1.0 / (1.0 + jnp.exp(-o))                 # only the conflict lane is kept

    out_ref[...] = jnp.where(coord_mask, sm,
                             jnp.where(lane == CONF_LANE, sig, o))


def init_params(key):
    """Synthetic params matching the torch module's shapes: orthogonal Linear
    weights (gain 1.0, stored [in,out]), zero biases, LayerNorm gamma=1/beta=0."""
    keys = iter(jax.random.split(key, 40))
    ortho = jax.nn.initializers.orthogonal()

    def lin(in_dim, out_dim):
        w = ortho(next(keys), (in_dim, out_dim), jnp.float32)
        b = jnp.zeros((1, out_dim), jnp.float32)
        return w, b

    attn = []
    for d in GROUP_DIMS:                 # only v_proj / out_proj matter for seq_len==1
        wv, bv = lin(d, d)
        wo, bo = lin(d, d)
        attn.append((wv, bv, wo, bo))

    fusion_w, fusion_b = lin(COMBINED_DIM, COMBINED_DIM)

    mlp = []
    prev = COMBINED_DIM
    for hdim in HIDDEN_DIMS:
        w, b = lin(prev, hdim)
        mlp.append((w, b,
                    jnp.ones((1, hdim), jnp.float32),
                    jnp.zeros((1, hdim), jnp.float32)))
        prev = hdim

    wval, bval = lin(prev, 1)
    wcoord, bcoord = lin(prev, NUM_AGENTS)
    wconf, bconf = lin(prev, 1)

    return {
        "attn": attn,
        "fusion_w": fusion_w, "fusion_b": fusion_b,
        "mlp": mlp,
        "value": (wval, bval),
        "coord": (wcoord, bcoord),
        "conflict": (wconf, bconf),
    }


def _pack_params(params):
    """Algebraic precompute (cheap, per-call under jit):
       - collapse attention heads + fusion into W_comb [83,83], b_comb [1,83]
       - MLP weights -> bf16, per-block [bias; gamma; beta] blobs
       - fuse value/coord/conflict heads + feature passthrough into [64,128]."""
    offs = [0]
    for d in GROUP_DIMS:
        offs.append(offs[-1] + d)

    wc_rows = []
    b_comb = params["fusion_b"]
    for g, (wv, bv, wo, bo) in enumerate(params["attn"]):
        lo, hi = offs[g], offs[g + 1]
        wg = wv @ wo                         # [d, d]
        bg = bv @ wo + bo                    # [1, d]
        wf_g = params["fusion_w"][lo:hi, :]  # [d, 83]
        wc_rows.append(wg @ wf_g)
        b_comb = b_comb + bg @ wf_g
    w_comb = jnp.concatenate(wc_rows, axis=0)            # [83, 83]

    mlp_w = [w.astype(jnp.bfloat16) for (w, _, _, _) in params["mlp"]]
    mlp_p = [jnp.concatenate([b, g, be], axis=0) for (_, b, g, be) in params["mlp"]]

    wval, bval = params["value"]
    wcoord, bcoord = params["coord"]
    wconf, bconf = params["conflict"]
    w_heads = jnp.concatenate(
        [jnp.eye(FEAT_DIM, dtype=jnp.float32), wval, wcoord, wconf,
         jnp.zeros((FEAT_DIM, HEAD_PAD), jnp.float32)], axis=1)      # [64, 128]
    b_heads = jnp.concatenate(
        [jnp.zeros((1, FEAT_DIM), jnp.float32), bval, bcoord, bconf,
         jnp.zeros((1, HEAD_PAD), jnp.float32)], axis=1)             # [1, 128]

    return w_comb, b_comb, mlp_w, mlp_p, w_heads, b_heads


def enhanced_5agent_critic_forward(combined_state, params, *, max_batch_tile=256):
    """combined_state: [B, 83]. Returns dict like the torch module."""
    x = combined_state.astype(jnp.float32)
    B = x.shape[0]

    w_comb, b_comb, mlp_w, mlp_p, w_heads, b_heads = _pack_params(params)

    # batch tiling: small batches -> single tile (rounded to sublane 8),
    # large batches -> 256-row tiles pipelined over a "parallel" grid axis.
    if B <= max_batch_tile:
        tb = max(8, ((B + 7) // 8) * 8)
    else:
        tb = max_batch_tile
    bp = ((B + tb - 1) // tb) * tb
    if bp != B:
        x = jnp.pad(x, ((0, bp - B), (0, 0)))

    consts = [w_comb, b_comb,
              mlp_w[0], mlp_p[0], mlp_w[1], mlp_p[1],
              mlp_w[2], mlp_p[2], mlp_w[3], mlp_p[3],
              w_heads, b_heads]

    def _const_spec(a):
        # full array as one block, constant index -> stays VMEM-resident
        return pl.BlockSpec(a.shape, lambda i: (0, 0))

    out = pl.pallas_call(
        _critic_kernel,
        out_shape=jax.ShapeDtypeStruct((bp, HEAD_SLAB), jnp.float32),
        grid=(bp // tb,),
        in_specs=[pl.BlockSpec((tb, COMBINED_DIM), lambda i: (i, 0))]
                 + [_const_spec(a) for a in consts],
        out_specs=pl.BlockSpec((tb, HEAD_SLAB), lambda i: (i, 0)),
        compiler_params=pltpu.CompilerParams(
            dimension_semantics=("parallel",)),
    )(x, *consts)

    return {
        "state_value": out[:B, VALUE_LANE:VALUE_LANE + 1],
        "coordination_weights": out[:B, COORD_LO:COORD_HI],
        "conflict_score": out[:B, CONF_LANE:CONF_LANE + 1],
        "features": out[:B, :FEAT_DIM],
    }


if __name__ == "__main__":
    key = jax.random.PRNGKey(0)
    kx, kp = jax.random.split(key)

    B = 4
    combined_state = jax.random.normal(kx, (B, COMBINED_DIM), jnp.float32)
    params = init_params(kp)

    fwd = jax.jit(enhanced_5agent_critic_forward)
    out = fwd(combined_state, params)
    jax.block_until_ready(out)

    assert out["state_value"].shape == (B, 1)
    assert out["coordination_weights"].shape == (B, NUM_AGENTS)
    assert out["conflict_score"].shape == (B, 1)
    assert out["features"].shape == (B, FEAT_DIM)
    assert bool(jnp.all(jnp.isfinite(out["state_value"])))
    assert bool(jnp.all(jnp.isfinite(out["coordination_weights"])))
    assert bool(jnp.all(jnp.isfinite(out["conflict_score"])))
    assert bool(jnp.all(jnp.isfinite(out["features"])))

    print("KERNEL_OK")
</pallas_src>

<mosaic_0001>
module attributes {stable_mosaic.version = 11 : i64} {
  func.func @_critic_kernel(%arg0: i32, %arg1: memref<8x83xf32, #tpu.memory_space<vmem>>, %arg2: memref<83x83xf32, #tpu.memory_space<vmem>>, %arg3: memref<1x83xf32, #tpu.memory_space<vmem>>, %arg4: memref<83x512xbf16, #tpu.memory_space<vmem>>, %arg5: memref<3x512xf32, #tpu.memory_space<vmem>>, %arg6: memref<512x256xbf16, #tpu.memory_space<vmem>>, %arg7: memref<3x256xf32, #tpu.memory_space<vmem>>, %arg8: memref<256x128xbf16, #tpu.memory_space<vmem>>, %arg9: memref<3x128xf32, #tpu.memory_space<vmem>>, %arg10: memref<128x64xbf16, #tpu.memory_space<vmem>>, %arg11: memref<3x64xf32, #tpu.memory_space<vmem>>, %arg12: memref<64x128xf32, #tpu.memory_space<vmem>>, %arg13: memref<1x128xf32, #tpu.memory_space<vmem>>, %arg14: memref<8x128xf32, #tpu.memory_space<vmem>>) attributes {dimension_semantics = [#tpu.dimension_semantics<parallel>], iteration_bounds = array<i64: 1>, scalar_prefetch = 0 : i64, scratch_operands = 0 : i64, tpu.core_type = #tpu.core_type<tc>, window_params = [{transform_indices = @transform_0, window_bounds = array<i64: 8, 83>}, {pipeline_mode = #tpu.pipeline_mode<synchronous>, transform_indices = @transform_1, window_bounds = array<i64: 83, 83>}, {pipeline_mode = #tpu.pipeline_mode<synchronous>, transform_indices = @transform_2, window_bounds = array<i64: 1, 83>}, {pipeline_mode = #tpu.pipeline_mode<synchronous>, transform_indices = @transform_3, window_bounds = array<i64: 83, 512>}, {pipeline_mode = #tpu.pipeline_mode<synchronous>, transform_indices = @transform_4, window_bounds = array<i64: 3, 512>}, {pipeline_mode = #tpu.pipeline_mode<synchronous>, transform_indices = @transform_5, window_bounds = array<i64: 512, 256>}, {pipeline_mode = #tpu.pipeline_mode<synchronous>, transform_indices = @transform_6, window_bounds = array<i64: 3, 256>}, {pipeline_mode = #tpu.pipeline_mode<synchronous>, transform_indices = @transform_7, window_bounds = array<i64: 256, 128>}, {pipeline_mode = #tpu.pipeline_mode<synchronous>, transform_indices = @transform_8, window_bounds = array<i64: 3, 128>}, {pipeline_mode = #tpu.pipeline_mode<synchronous>, transform_indices = @transform_9, window_bounds = array<i64: 128, 64>}, {pipeline_mode = #tpu.pipeline_mode<synchronous>, transform_indices = @transform_10, window_bounds = array<i64: 3, 64>}, {pipeline_mode = #tpu.pipeline_mode<synchronous>, transform_indices = @transform_11, window_bounds = array<i64: 64, 128>}, {pipeline_mode = #tpu.pipeline_mode<synchronous>, transform_indices = @transform_12, window_bounds = array<i64: 1, 128>}, {transform_indices = @transform_13, window_bounds = array<i64: 8, 128>}]} {
    %c0 = arith.constant 0 : index
    %c0_0 = arith.constant 0 : index
    %0 = vector.load %arg1[%c0, %c0_0] : memref<8x83xf32, #tpu.memory_space<vmem>>, vector<8x83xf32>
    %c0_1 = arith.constant 0 : index
    %c0_2 = arith.constant 0 : index
    %1 = vector.load %arg2[%c0_1, %c0_2] : memref<83x83xf32, #tpu.memory_space<vmem>>, vector<83x83xf32>
    %cst = arith.constant dense<0.000000e+00> : vector<8x83xf32>
    %2 = tpu.matmul %0, %1, %cst {dimension_numbers = #tpu.dot_dimension_numbers<[1], [0], [0], [1], [0, 0, 1, 1], [], []>} : vector<8x83xf32>, vector<83x83xf32>, vector<8x83xf32> -> vector<8x83xf32>
    %3 = arith.addf %0, %2 : vector<8x83xf32>
    %c0_3 = arith.constant 0 : index
    %c0_4 = arith.constant 0 : index
    %4 = vector.load %arg3[%c0_3, %c0_4] : memref<1x83xf32, #tpu.memory_space<vmem>>, vector<1x83xf32>
    %5 = vector.broadcast %4 : vector<1x83xf32> to vector<8x83xf32>
    %6 = arith.addf %3, %5 : vector<8x83xf32>
    %7 = arith.truncf %6 : vector<8x83xf32> to vector<8x83xbf16>
    %c0_5 = arith.constant 0 : index
    %c0_6 = arith.constant 0 : index
    %8 = vector.load %arg4[%c0_5, %c0_6] : memref<83x512xbf16, #tpu.memory_space<vmem>>, vector<83x512xbf16>
    %cst_7 = arith.constant dense<0.000000e+00> : vector<8x512xf32>
    %9 = tpu.matmul %7, %8, %cst_7 {dimension_numbers = #tpu.dot_dimension_numbers<[1], [0], [0], [1], [0, 0, 1, 1], [], []>} : vector<8x83xbf16>, vector<83x512xbf16>, vector<8x512xf32> -> vector<8x512xf32>
    %c0_8 = arith.constant 0 : index
    %c0_9 = arith.constant 0 : index
    %10 = vector.load %arg5[%c0_8, %c0_9] : memref<3x512xf32, #tpu.memory_space<vmem>>, vector<1x512xf32>
    %11 = vector.broadcast %10 : vector<1x512xf32> to vector<8x512xf32>
    %12 = arith.addf %9, %11 : vector<8x512xf32>
    %cst_10 = arith.constant 0.000000e+00 : f32
    %13 = vector.broadcast %cst_10 : f32 to vector<8x512xf32>
    %14 = arith.maximumf %12, %13 : vector<8x512xf32>
    %cst_11 = arith.constant dense<0.000000e+00> : vector<8xf32>
    %15 = vector.multi_reduction <add>, %14, %cst_11 [1] : vector<8x512xf32> to vector<8xf32>
    %16 = vector.shape_cast %15 : vector<8xf32> to vector<8x1xf32>
    %cst_12 = arith.constant 5.120000e+02 : f32
    %17 = vector.broadcast %cst_12 : f32 to vector<8x1xf32>
    %18 = arith.divf %16, %17 : vector<8x1xf32>
    %19 = vector.broadcast %18 : vector<8x1xf32> to vector<8x512xf32>
    %20 = arith.subf %14, %19 : vector<8x512xf32>
    %21 = arith.mulf %20, %20 : vector<8x512xf32>
    %cst_13 = arith.constant dense<0.000000e+00> : vector<8xf32>
    %22 = vector.multi_reduction <add>, %21, %cst_13 [1] : vector<8x512xf32> to vector<8xf32>
    %23 = vector.shape_cast %22 : vector<8xf32> to vector<8x1xf32>
    %cst_14 = arith.constant 5.120000e+02 : f32
    %24 = vector.broadcast %cst_14 : f32 to vector<8x1xf32>
    %25 = arith.divf %23, %24 : vector<8x1xf32>
    %26 = vector.broadcast %18 : vector<8x1xf32> to vector<8x512xf32>
    %27 = arith.subf %14, %26 : vector<8x512xf32>
    %cst_15 = arith.constant 9.99999974E-6 : f32
    %28 = vector.broadcast %cst_15 : f32 to vector<8x1xf32>
    %29 = arith.addf %25, %28 : vector<8x1xf32>
    %30 = math.rsqrt %29 : vector<8x1xf32>
    %31 = vector.broadcast %30 : vector<8x1xf32> to vector<8x512xf32>
    %32 = arith.mulf %27, %31 : vector<8x512xf32>
    %c1 = arith.constant 1 : index
    %c0_16 = arith.constant 0 : index
    %33 = vector.load %arg5[%c1, %c0_16] : memref<3x512xf32, #tpu.memory_space<vmem>>, vector<1x512xf32>
    %34 = vector.broadcast %33 : vector<1x512xf32> to vector<8x512xf32>
    %35 = arith.mulf %32, %34 : vector<8x512xf32>
    %c2 = arith.constant 2 : index
    %c0_17 = arith.constant 0 : index
    %36 = vector.load %arg5[%c2, %c0_17] : memref<3x512xf32, #tpu.memory_space<vmem>>, vector<1x512xf32>
    %37 = vector.broadcast %36 : vector<1x512xf32> to vector<8x512xf32>
    %38 = arith.addf %35, %37 : vector<8x512xf32>
    %39 = arith.truncf %38 : vector<8x512xf32> to vector<8x512xbf16>
    %c0_18 = arith.constant 0 : index
    %c0_19 = arith.constant 0 : index
    %40 = vector.load %arg6[%c0_18, %c0_19] : memref<512x256xbf16, #tpu.memory_space<vmem>>, vector<512x256xbf16>
    %cst_20 = arith.constant dense<0.000000e+00> : vector<8x256xf32>
    %41 = tpu.matmul %39, %40, %cst_20 {dimension_numbers = #tpu.dot_dimension_numbers<[1], [0], [0], [1], [0, 0, 1, 1], [], []>} : vector<8x512xbf16>, vector<512x256xbf16>, vector<8x256xf32> -> vector<8x256xf32>
    %c0_21 = arith.constant 0 : index
    %c0_22 = arith.constant 0 : index
    %42 = vector.load %arg7[%c0_21, %c0_22] : memref<3x256xf32, #tpu.memory_space<vmem>>, vector<1x256xf32>
    %43 = vector.broadcast %42 : vector<1x256xf32> to vector<8x256xf32>
    %44 = arith.addf %41, %43 : vector<8x256xf32>
    %cst_23 = arith.constant 0.000000e+00 : f32
    %45 = vector.broadcast %cst_23 : f32 to vector<8x256xf32>
    %46 = arith.maximumf %44, %45 : vector<8x256xf32>
    %cst_24 = arith.constant dense<0.000000e+00> : vector<8xf32>
    %47 = vector.multi_reduction <add>, %46, %cst_24 [1] : vector<8x256xf32> to vector<8xf32>
    %48 = vector.shape_cast %47 : vector<8xf32> to vector<8x1xf32>
    %cst_25 = arith.constant 2.560000e+02 : f32
    %49 = vector.broadcast %cst_25 : f32 to vector<8x1xf32>
    %50 = arith.divf %48, %49 : vector<8x1xf32>
    %51 = vector.broadcast %50 : vector<8x1xf32> to vector<8x256xf32>
    %52 = arith.subf %46, %51 : vector<8x256xf32>
    %53 = arith.mulf %52, %52 : vector<8x256xf32>
    %cst_26 = arith.constant dense<0.000000e+00> : vector<8xf32>
    %54 = vector.multi_reduction <add>, %53, %cst_26 [1] : vector<8x256xf32> to vector<8xf32>
    %55 = vector.shape_cast %54 : vector<8xf32> to vector<8x1xf32>
    %cst_27 = arith.constant 2.560000e+02 : f32
    %56 = vector.broadcast %cst_27 : f32 to vector<8x1xf32>
    %57 = arith.divf %55, %56 : vector<8x1xf32>
    %58 = vector.broadcast %50 : vector<8x1xf32> to vector<8x256xf32>
    %59 = arith.subf %46, %58 : vector<8x256xf32>
    %cst_28 = arith.constant 9.99999974E-6 : f32
    %60 = vector.broadcast %cst_28 : f32 to vector<8x1xf32>
    %61 = arith.addf %57, %60 : vector<8x1xf32>
    %62 = math.rsqrt %61 : vector<8x1xf32>
    %63 = vector.broadcast %62 : vector<8x1xf32> to vector<8x256xf32>
    %64 = arith.mulf %59, %63 : vector<8x256xf32>
    %c1_29 = arith.constant 1 : index
    %c0_30 = arith.constant 0 : index
    %65 = vector.load %arg7[%c1_29, %c0_30] : memref<3x256xf32, #tpu.memory_space<vmem>>, vector<1x256xf32>
    %66 = vector.broadcast %65 : vector<1x256xf32> to vector<8x256xf32>
    %67 = arith.mulf %64, %66 : vector<8x256xf32>
    %c2_31 = arith.constant 2 : index
    %c0_32 = arith.constant 0 : index
    %68 = vector.load %arg7[%c2_31, %c0_32] : memref<3x256xf32, #tpu.memory_space<vmem>>, vector<1x256xf32>
    %69 = vector.broadcast %68 : vector<1x256xf32> to vector<8x256xf32>
    %70 = arith.addf %67, %69 : vector<8x256xf32>
    %71 = arith.truncf %70 : vector<8x256xf32> to vector<8x256xbf16>
    %c0_33 = arith.constant 0 : index
    %c0_34 = arith.constant 0 : index
    %72 = vector.load %arg8[%c0_33, %c0_34] : memref<256x128xbf16, #tpu.memory_space<vmem>>, vector<256x128xbf16>
    %cst_35 = arith.constant dense<0.000000e+00> : vector<8x128xf32>
    %73 = tpu.matmul %71, %72, %cst_35 {dimension_numbers = #tpu.dot_dimension_numbers<[1], [0], [0], [1], [0, 0, 1, 1], [], []>} : vector<8x256xbf16>, vector<256x128xbf16>, vector<8x128xf32> -> vector<8x128xf32>
    %c0_36 = arith.constant 0 : index
    %c0_37 = arith.constant 0 : index
    %74 = vector.load %arg9[%c0_36, %c0_37] : memref<3x128xf32, #tpu.memory_space<vmem>>, vector<1x128xf32>
    %75 = vector.broadcast %74 : vector<1x128xf32> to vector<8x128xf32>
    %76 = arith.addf %73, %75 : vector<8x128xf32>
    %cst_38 = arith.constant 0.000000e+00 : f32
    %77 = vector.broadcast %cst_38 : f32 to vector<8x128xf32>
    %78 = arith.maximumf %76, %77 : vector<8x128xf32>
    %cst_39 = arith.constant dense<0.000000e+00> : vector<8xf32>
    %79 = vector.multi_reduction <add>, %78, %cst_39 [1] : vector<8x128xf32> to vector<8xf32>
    %80 = vector.shape_cast %79 : vector<8xf32> to vector<8x1xf32>
    %cst_40 = arith.constant 1.280000e+02 : f32
    %81 = vector.broadcast %cst_40 : f32 to vector<8x1xf32>
    %82 = arith.divf %80, %81 : vector<8x1xf32>
    %83 = vector.broadcast %82 : vector<8x1xf32> to vector<8x128xf32>
    %84 = arith.subf %78, %83 : vector<8x128xf32>
    %85 = arith.mulf %84, %84 : vector<8x128xf32>
    %cst_41 = arith.constant dense<0.000000e+00> : vector<8xf32>
    %86 = vector.multi_reduction <add>, %85, %cst_41 [1] : vector<8x128xf32> to vector<8xf32>
    %87 = vector.shape_cast %86 : vector<8xf32> to vector<8x1xf32>
    %cst_42 = arith.constant 1.280000e+02 : f32
    %88 = vector.broadcast %cst_42 : f32 to vector<8x1xf32>
    %89 = arith.divf %87, %88 : vector<8x1xf32>
    %90 = vector.broadcast %82 : vector<8x1xf32> to vector<8x128xf32>
    %91 = arith.subf %78, %90 : vector<8x128xf32>
    %cst_43 = arith.constant 9.99999974E-6 : f32
    %92 = vector.broadcast %cst_43 : f32 to vector<8x1xf32>
    %93 = arith.addf %89, %92 : vector<8x1xf32>
    %94 = math.rsqrt %93 : vector<8x1xf32>
    %95 = vector.broadcast %94 : vector<8x1xf32> to vector<8x128xf32>
    %96 = arith.mulf %91, %95 : vector<8x128xf32>
    %c1_44 = arith.constant 1 : index
    %c0_45 = arith.constant 0 : index
    %97 = vector.load %arg9[%c1_44, %c0_45] : memref<3x128xf32, #tpu.memory_space<vmem>>, vector<1x128xf32>
    %98 = vector.broadcast %97 : vector<1x128xf32> to vector<8x128xf32>
    %99 = arith.mulf %96, %98 : vector<8x128xf32>
    %c2_46 = arith.constant 2 : index
    %c0_47 = arith.constant 0 : index
    %100 = vector.load %arg9[%c2_46, %c0_47] : memref<3x128xf32, #tpu.memory_space<vmem>>, vector<1x128xf32>
    %101 = vector.broadcast %100 : vector<1x128xf32> to vector<8x128xf32>
    %102 = arith.addf %99, %101 : vector<8x128xf32>
    %103 = arith.truncf %102 : vector<8x128xf32> to vector<8x128xbf16>
    %c0_48 = arith.constant 0 : index
    %c0_49 = arith.constant 0 : index
    %104 = vector.load %arg10[%c0_48, %c0_49] : memref<128x64xbf16, #tpu.memory_space<vmem>>, vector<128x64xbf16>
    %cst_50 = arith.constant dense<0.000000e+00> : vector<8x64xf32>
    %105 = tpu.matmul %103, %104, %cst_50 {dimension_numbers = #tpu.dot_dimension_numbers<[1], [0], [0], [1], [0, 0, 1, 1], [], []>} : vector<8x128xbf16>, vector<128x64xbf16>, vector<8x64xf32> -> vector<8x64xf32>
    %c0_51 = arith.constant 0 : index
    %c0_52 = arith.constant 0 : index
    %106 = vector.load %arg11[%c0_51, %c0_52] : memref<3x64xf32, #tpu.memory_space<vmem>>, vector<1x64xf32>
    %107 = vector.broadcast %106 : vector<1x64xf32> to vector<8x64xf32>
    %108 = arith.addf %105, %107 : vector<8x64xf32>
    %cst_53 = arith.constant 0.000000e+00 : f32
    %109 = vector.broadcast %cst_53 : f32 to vector<8x64xf32>
    %110 = arith.maximumf %108, %109 : vector<8x64xf32>
    %cst_54 = arith.constant dense<0.000000e+00> : vector<8xf32>
    %111 = vector.multi_reduction <add>, %110, %cst_54 [1] : vector<8x64xf32> to vector<8xf32>
    %112 = vector.shape_cast %111 : vector<8xf32> to vector<8x1xf32>
    %cst_55 = arith.constant 6.400000e+01 : f32
    %113 = vector.broadcast %cst_55 : f32 to vector<8x1xf32>
    %114 = arith.divf %112, %113 : vector<8x1xf32>
    %115 = vector.broadcast %114 : vector<8x1xf32> to vector<8x64xf32>
    %116 = arith.subf %110, %115 : vector<8x64xf32>
    %117 = arith.mulf %116, %116 : vector<8x64xf32>
    %cst_56 = arith.constant dense<0.000000e+00> : vector<8xf32>
    %118 = vector.multi_reduction <add>, %117, %cst_56 [1] : vector<8x64xf32> to vector<8xf32>
    %119 = vector.shape_cast %118 : vector<8xf32> to vector<8x1xf32>
    %cst_57 = arith.constant 6.400000e+01 : f32
    %120 = vector.broadcast %cst_57 : f32 to vector<8x1xf32>
    %121 = arith.divf %119, %120 : vector<8x1xf32>
    %122 = vector.broadcast %114 : vector<8x1xf32> to vector<8x64xf32>
    %123 = arith.subf %110, %122 : vector<8x64xf32>
    %cst_58 = arith.constant 9.99999974E-6 : f32
    %124 = vector.broadcast %cst_58 : f32 to vector<8x1xf32>
    %125 = arith.addf %121, %124 : vector<8x1xf32>
    %126 = math.rsqrt %125 : vector<8x1xf32>
    %127 = vector.broadcast %126 : vector<8x1xf32> to vector<8x64xf32>
    %128 = arith.mulf %123, %127 : vector<8x64xf32>
    %c1_59 = arith.constant 1 : index
    %c0_60 = arith.constant 0 : index
    %129 = vector.load %arg11[%c1_59, %c0_60] : memref<3x64xf32, #tpu.memory_space<vmem>>, vector<1x64xf32>
    %130 = vector.broadcast %129 : vector<1x64xf32> to vector<8x64xf32>
    %131 = arith.mulf %128, %130 : vector<8x64xf32>
    %c2_61 = arith.constant 2 : index
    %c0_62 = arith.constant 0 : index
    %132 = vector.load %arg11[%c2_61, %c0_62] : memref<3x64xf32, #tpu.memory_space<vmem>>, vector<1x64xf32>
    %133 = vector.broadcast %132 : vector<1x64xf32> to vector<8x64xf32>
    %134 = arith.addf %131, %133 : vector<8x64xf32>
    %c0_63 = arith.constant 0 : index
    %c0_64 = arith.constant 0 : index
    %135 = vector.load %arg12[%c0_63, %c0_64] : memref<64x128xf32, #tpu.memory_space<vmem>>, vector<64x128xf32>
    %cst_65 = arith.constant dense<0.000000e+00> : vector<8x128xf32>
    %136 = tpu.matmul %134, %135, %cst_65 {dimension_numbers = #tpu.dot_dimension_numbers<[1], [0], [0], [1], [0, 0, 1, 1], [], []>} : vector<8x64xf32>, vector<64x128xf32>, vector<8x128xf32> -> vector<8x128xf32>
    %c0_66 = arith.constant 0 : index
    %c0_67 = arith.constant 0 : index
    %137 = vector.load %arg13[%c0_66, %c0_67] : memref<1x128xf32, #tpu.memory_space<vmem>>, vector<1x128xf32>
    %138 = vector.broadcast %137 : vector<1x128xf32> to vector<8x128xf32>
    %139 = arith.addf %136, %138 : vector<8x128xf32>
    %140 = tpu.iota {dimensions = array<i32: 1>} : vector<8x128xi32>
    %c65_i32 = arith.constant 65 : i32
    %141 = vector.broadcast %c65_i32 : i32 to vector<8x128xi32>
    %142 = arith.cmpi sge, %140, %141 : vector<8x128xi32>
    %c70_i32 = arith.constant 70 : i32
    %143 = vector.broadcast %c70_i32 : i32 to vector<8x128xi32>
    %144 = arith.cmpi slt, %140, %143 : vector<8x128xi32>
    %145 = arith.andi %142, %144 : vector<8x128xi1>
    %cst_68 = arith.constant 0xFF800000 : f32
    %146 = vector.broadcast %cst_68 : f32 to vector<8x128xf32>
    %147 = arith.select %145, %139, %146 : vector<8x128xi1>, vector<8x128xf32>
    %cst_69 = arith.constant dense<0xFF800000> : vector<8xf32>
    %148 = vector.multi_reduction <maximumf>, %147, %cst_69 [1] : vector<8x128xf32> to vector<8xf32>
    %149 = vector.shape_cast %148 : vector<8xf32> to vector<8x1xf32>
    %150 = vector.broadcast %149 : vector<8x1xf32> to vector<8x128xf32>
    %151 = arith.subf %147, %150 : vector<8x128xf32>
    %152 = math.exp %151 : vector<8x128xf32>
    %cst_70 = arith.constant dense<0.000000e+00> : vector<8xf32>
    %153 = vector.multi_reduction <add>, %152, %cst_70 [1] : vector<8x128xf32> to vector<8xf32>
    %154 = vector.shape_cast %153 : vector<8xf32> to vector<8x1xf32>
    %155 = tpu.reciprocal %154 {approx = true} : vector<8x1xf32> -> vector<8x1xf32>
    %156 = vector.broadcast %155 : vector<8x1xf32> to vector<8x128xf32>
    %157 = arith.mulf %152, %156 : vector<8x128xf32>
    %cst_71 = arith.constant 0.000000e+00 : f32
    %158 = vector.broadcast %cst_71 : f32 to vector<8x128xf32>
    %159 = arith.subf %158, %139 : vector<8x128xf32>
    %160 = math.exp %159 : vector<8x128xf32>
    %cst_72 = arith.constant 1.000000e+00 : f32
    %161 = vector.broadcast %cst_72 : f32 to vector<8x128xf32>
    %162 = arith.addf %161, %160 : vector<8x128xf32>
    %cst_73 = arith.constant 1.000000e+00 : f32
    %163 = vector.broadcast %cst_73 : f32 to vector<8x128xf32>
    %164 = arith.divf %163, %162 : vector<8x128xf32>
    %c70_i32_74 = arith.constant 70 : i32
    %165 = vector.broadcast %c70_i32_74 : i32 to vector<8x128xi32>
    %166 = arith.cmpi eq, %140, %165 : vector<8x128xi32>
    %167 = arith.select %166, %164, %139 : vector<8x128xi1>, vector<8x128xf32>
    %168 = arith.select %145, %157, %167 : vector<8x128xi1>, vector<8x128xf32>
    %c0_75 = arith.constant 0 : index
    %c0_76 = arith.constant 0 : index
    %169 = vector.load %arg14[%c0_75, %c0_76] : memref<8x128xf32, #tpu.memory_space<vmem>>, vector<8x128xf32>
    tpu.vector_store %arg14[%c0_75, %c0_76], %168 {strides = array<i32>} : memref<8x128xf32, #tpu.memory_space<vmem>>, vector<8x128xf32>,
    return
  }
  func.func @transform_0(%arg0: i32) -> (i32, i32) {
    %c0_i32 = arith.constant 0 : i32
    %c0_i32_0 = arith.constant 0 : i32
    return %arg0, %c0_i32 : i32, i32
  }
  func.func @transform_1(%arg0: i32) -> (i32, i32) {
    %c0_i32 = arith.constant 0 : i32
    %c0_i32_0 = arith.constant 0 : i32
    %c0_i32_1 = arith.constant 0 : i32
    return %c0_i32, %c0_i32_0 : i32, i32
  }
  func.func @transform_2(%arg0: i32) -> (i32, i32) {
    %c0_i32 = arith.constant 0 : i32
    %c0_i32_0 = arith.constant 0 : i32
    %c0_i32_1 = arith.constant 0 : i32
    return %c0_i32, %c0_i32_0 : i32, i32
  }
  func.func @transform_3(%arg0: i32) -> (i32, i32) {
    %c0_i32 = arith.constant 0 : i32
    %c0_i32_0 = arith.constant 0 : i32
    %c0_i32_1 = arith.constant 0 : i32
    return %c0_i32, %c0_i32_0 : i32, i32
  }
  func.func @transform_4(%arg0: i32) -> (i32, i32) {
    %c0_i32 = arith.constant 0 : i32
    %c0_i32_0 = arith.constant 0 : i32
    %c0_i32_1 = arith.constant 0 : i32
    return %c0_i32, %c0_i32_0 : i32, i32
  }
  func.func @transform_5(%arg0: i32) -> (i32, i32) {
    %c0_i32 = arith.constant 0 : i32
    %c0_i32_0 = arith.constant 0 : i32
    %c0_i32_1 = arith.constant 0 : i32
    return %c0_i32, %c0_i32_0 : i32, i32
  }
  func.func @transform_6(%arg0: i32) -> (i32, i32) {
    %c0_i32 = arith.constant 0 : i32
    %c0_i32_0 = arith.constant 0 : i32
    %c0_i32_1 = arith.constant 0 : i32
    return %c0_i32, %c0_i32_0 : i32, i32
  }
  func.func @transform_7(%arg0: i32) -> (i32, i32) {
    %c0_i32 = arith.constant 0 : i32
    %c0_i32_0 = arith.constant 0 : i32
    %c0_i32_1 = arith.constant 0 : i32
    return %c0_i32, %c0_i32_0 : i32, i32
  }
  func.func @transform_8(%arg0: i32) -> (i32, i32) {
    %c0_i32 = arith.constant 0 : i32
    %c0_i32_0 = arith.constant 0 : i32
    %c0_i32_1 = arith.constant 0 : i32
    return %c0_i32, %c0_i32_0 : i32, i32
  }
  func.func @transform_9(%arg0: i32) -> (i32, i32) {
    %c0_i32 = arith.constant 0 : i32
    %c0_i32_0 = arith.constant 0 : i32
    %c0_i32_1 = arith.constant 0 : i32
    return %c0_i32, %c0_i32_0 : i32, i32
  }
  func.func @transform_10(%arg0: i32) -> (i32, i32) {
    %c0_i32 = arith.constant 0 : i32
    %c0_i32_0 = arith.constant 0 : i32
    %c0_i32_1 = arith.constant 0 : i32
    return %c0_i32, %c0_i32_0 : i32, i32
  }
  func.func @transform_11(%arg0: i32) -> (i32, i32) {
    %c0_i32 = arith.constant 0 : i32
    %c0_i32_0 = arith.constant 0 : i32
    %c0_i32_1 = arith.constant 0 : i32
    return %c0_i32, %c0_i32_0 : i32, i32
  }
  func.func @transform_12(%arg0: i32) -> (i32, i32) {
    %c0_i32 = arith.constant 0 : i32
    %c0_i32_0 = arith.constant 0 : i32
    %c0_i32_1 = arith.constant 0 : i32
    return %c0_i32, %c0_i32_0 : i32, i32
  }
  func.func @transform_13(%arg0: i32) -> (i32, i32) {
    %c0_i32 = arith.constant 0 : i32
    %c0_i32_0 = arith.constant 0 : i32
    return %arg0, %c0_i32 : i32, i32
  }
}

</mosaic_0001>

<bundles_post_ra>
// kernel: enhanced_5agent_critic_forward.1
= control target key start
LH: loop header
LB: loop body
LE: loop exit
PB: predicated region body
PF: predicated region fallthrough
CT: control target
= control target key end

     0   :  { %v1924_v0 = vmov 0.0|0.0   ;;  %vm1925_vm0 = vmmov 0   ;;  %v1926_v4 = vmov 0.0   ;;  %vm61_vm1 = vcmask 1042432   ;;  %s2510_s1 = inlined_call_operand.vmem [shape: f32[83,83], index: 1, kind: input, shape index: {}]   ;;  %s2511_s3 = inlined_call_operand.vmem [shape: bf16[83,512], index: 3, kind: input, shape index: {}]   ;;  %s2512_s0 = inlined_call_operand.vmem [shape: f32[8,83], index: 0, kind: input, shape index: {}]   ;;  %s2513_s2 = inlined_call_operand.vmem [shape: f32[1,83], index: 2, kind: input, shape index: {}]   ;;  %s2514_s4 = inlined_call_operand.vmem [shape: f32[3,512], index: 4, kind: input, shape index: {}]   ;;  %s2515_s5 = inlined_call_operand.vmem [shape: bf16[512,256], index: 5, kind: input, shape index: {}]   ;;  %s2516_s6 = inlined_call_operand.vmem [shape: f32[3,256], index: 6, kind: input, shape index: {}]   ;;  %s2517_s7 = inlined_call_operand.vmem [shape: bf16[256,128], index: 7, kind: input, shape index: {}]   ;;  %s2518_s8 = inlined_call_operand.vmem [shape: f32[3,128], index: 8, kind: input, shape index: {}]   ;;  %s2519_s9 = inlined_call_operand.vmem [shape: bf16[128,64], index: 9, kind: input, shape index: {}]   ;;  %s2520_s10 = inlined_call_operand.vmem [shape: f32[3,64], index: 10, kind: input, shape index: {}]   ;;  %s2521_s11 = inlined_call_operand.vmem [shape: f32[64,128], index: 11, kind: input, shape index: {}]   ;;  %s2522_s12 = inlined_call_operand.vmem [shape: f32[1,128], index: 12, kind: input, shape index: {}]   ;;  %s2523_s13 = inlined_call_operand.vmem [shape: f32[8,128], index: 13, kind: output, shape index: {}]  }
   0x1   :  { %1716 = vmatprep.subr.bf16.mxu0 %v1924_v0  ;;  %v46_v1 = vld [vmem:[%s2510_s1] sm:$0xff]  ;;  %v47_v2 = vld [vmem:[%s2510_s1 + $0x8] sm:$0xff]  ;;  %v48_v3 = vld [vmem:[%s2510_s1 + $0x10] sm:$0xff]  ;;  %1674 = vmatprep.mubr.msk.f32.mxu0 %vm1925_vm0, %v1926_v4  ;;  %vm57_vm2 = vcmask 678912   ;;  %vm302_vm3 = vcmask 1040384   ;;  %vm303_vm4 = vcmask 1041408   ;;  %v169_v62 = vlaneseq }
   0x2   :  { %v1717_v5 = vpack.c.bf16 %v47_v2, %v46_v1  ;;  %v49_v6 = vld [vmem:[%s2510_s1 + $0x18] sm:$0xff]  ;;  %v50_v8 = vld [vmem:[%s2510_s1 + $0x20] sm:$0xff]  ;;  %v51_v9 = vld [vmem:[%s2510_s1 + $0x28] sm:$0xff]  ;;  %v1927_v31 = vmov 65535   ;;  %v1928_v38 = vmov 0   ;;  %vm1327_vm5 = vcmask 523264  }
   0x3   :  { %v1720_v7 = vpack.c.bf16 %v49_v6, %v48_v3  ;;  %v1723_v10 = vpack.c.bf16 %v51_v9, %v50_v8  ;;  %v52_v11 = vld [vmem:[%s2510_s1 + $0x30] sm:$0xff]  ;;  %v53_v12 = vld [vmem:[%s2510_s1 + $0x38] sm:$0xff]  ;;  %v54_v13 = vld [vmem:[%s2510_s1 + $0x40] sm:$0xff]  ;;  %v304_v32 = vsel %vm302_vm3, 4294967295, %v1927_v31  ;;  %v170_v1 = vshrl.u32 %v169_v62, 7 }
   0x4   :  { %1718 = vmatpush3.bf16.msra.mxu0 %v1717_v5  ;;  %v55_v14 = vld [vmem:[%s2510_s1 + $0x48] sm:$0xff]  ;;  %v1726_v15 = vpack.c.bf16 %v53_v12, %v52_v11  ;;  %v56_v17 = vld [vmem:[%s2510_s1 + $0x50] sm:$0x7]  ;;  %v1756_v18 = vld [vmem:[%s2511_s3 + $0x4] ss:$16 sps:$4 sm:$0xff]   ;;  %v305_v34 = vsel %vm303_vm4, %v304_v32, 0 }
   0x5   :  { %1719 = vmatprep.subr.bf16.mxu0 %v1924_v0  ;;  %v1729_v16 = vpack.c.bf16 %v55_v14, %v54_v13  ;;  %v45_v19 = vld [vmem:[%s2512_s0] sm:$0xff]  ;;  %v1773_v37 = vld [vmem:[%s2511_s3 + $0xc] ss:$16 sps:$4 sm:$0xff]   ;;  %v1771_v44 = vld [vmem:[%s2511_s3 + $0x8] ss:$16 sps:$4 sm:$0xff]   ;;  %v2116_v2 = vsub.s32 0, %v170_v1 }
   0x6   :  { %v1754_v20 = vld [vmem:[%s2511_s3] ss:$16 sps:$4 sm:$0xff]   ;;  %v1759_v21 = vld [vmem:[%s2511_s3 + $0x24] ss:$16 sps:$4 sm:$0xff]   ;;  %v1776_v46 = vld [vmem:[%s2511_s3 + $0x2c] ss:$16 sps:$4 sm:$0xff]  }
   0x7   :  { %v1757_v22 = vld [vmem:[%s2511_s3 + $0x20] ss:$16 sps:$4 sm:$0xff]   ;;  %v1762_v23 = vld [vmem:[%s2511_s3 + $0x44] ss:$16 sps:$4 sm:$0xff]   ;;  %v1774_v47 = vld [vmem:[%s2511_s3 + $0x28] ss:$16 sps:$4 sm:$0xff]  }
   0x8   :  { %1721 = vmatpush3.bf16.msra.mxu0 %v1720_v7  ;;  %v1760_v24 = vld [vmem:[%s2511_s3 + $0x40] ss:$16 sps:$4 sm:$0xff]   ;;  %v1765_v25 = vld [vmem:[%s2511_s3 + $0x64] ss:$16 sps:$4 sm:$0xff]   ;;  %v1779_v48 = vld [vmem:[%s2511_s3 + $0x4c] ss:$16 sps:$4 sm:$0xff]  }
   0x9   :  { %1722 = vmatprep.subr.bf16.mxu0 %v1924_v0  ;;  %v1763_v26 = vld [vmem:[%s2511_s3 + $0x60] ss:$16 sps:$4 sm:$0xff]   ;;  %v1768_v27 = vld [vmem:[%s2511_s3 + $0x84] ss:$16 sps:$4 sm:$0xff]   ;;  %v1777_v49 = vld [vmem:[%s2511_s3 + $0x48] ss:$16 sps:$4 sm:$0xff]  }
   0xa   :  { %v1766_v28 = vld [vmem:[%s2511_s3 + $0x80] ss:$16 sps:$4 sm:$0xff]   ;;  %v1782_v50 = vld [vmem:[%s2511_s3 + $0x6c] ss:$16 sps:$4 sm:$0xff]   ;;  %v1780_v52 = vld [vmem:[%s2511_s3 + $0x68] ss:$16 sps:$4 sm:$0xff]  }
   0xb   :  { %v165_v29 = vld [vmem:[%s2511_s3 + $0xa0] sm:$0x33]  ;;  %v166_v51 = vld [vmem:[%s2511_s3 + $0xa8] sm:$0x33]  ;;  %v2118_v3 = vsub.s32 1, %v170_v1  ;;  %v2125_v8 = vsub.s32 2, %v170_v1 }
   0xc   :  { %1724 = vmatpush3.bf16.msra.mxu0 %v1723_v10  ;;  %v1495_v30 = vcombine.high %v165_v29, %v165_v29  ;;  %v1494_v33 = vcombine.low %v165_v29, %v165_v29  ;;  %v1473_v40 = vld [vmem:[%s2513_s2] ss:$0 sm:$0xff]  ;;  %v1785_v53 = vld [vmem:[%s2511_s3 + $0x8c] ss:$16 sps:$4 sm:$0xff]   ;;  %v1497_v54 = vcombine.high %v166_v51, %v166_v51  ;;  %v1783_v55 = vld [vmem:[%s2511_s3 + $0x88] ss:$16 sps:$4 sm:$0xff]   ;;  %v1496_v56 = vcombine.low %v166_v51, %v166_v51 }
   0xd   :  { %1725 = vmatprep.subr.bf16.mxu0 %v1924_v0  ;;  %v167_v5 = vld [vmem:[%s2514_s4] ss:$4 sm:$0xf]  ;;  %v2127_v9 = vsub.s32 3, %v170_v1  ;;  %v1791_v29 = vld [vmem:[%s2515_s5 + $0x14] ss:$8 sps:$4 sm:$0xff]  }
   0xe   :  { %v310_v35 = vand.u32 %v1495_v30, %v305_v34  ;;  %v307_v36 = vand.u32 %v1494_v33, %v305_v34  ;;  %v316_v57 = vand.u32 %v1497_v54, %v305_v34  ;;  %v313_v58 = vand.u32 %v1496_v56, %v305_v34  ;;  %v1793_v30 = vld [vmem:[%s2515_s5 + $0x10] ss:$8 sps:$4 sm:$0xff]   ;;  %v1794_v31 = vld [vmem:[%s2515_s5 + $0x24] ss:$8 sps:$4 sm:$0xff]   ;;  %v1796_v32 = vld [vmem:[%s2515_s5 + $0x20] ss:$8 sps:$4 sm:$0xff]  }
   0xf   :  { %v172_v6 = vrot.slane %v167_v5, %v2116_v2  ;;  %v176_v7 = vrot.slane %v167_v5, %v2118_v3  ;;  %v180_v12 = vrot.slane %v167_v5, %v2125_v8  ;;  %v184_v13 = vrot.slane %v167_v5, %v2127_v9  ;;  %v1797_v33 = vld [vmem:[%s2515_s5 + $0x34] ss:$8 sps:$4 sm:$0xff]   ;;  %v1799_v34 = vld [vmem:[%s2515_s5 + $0x30] ss:$8 sps:$4 sm:$0xff]   ;;  %v1824_v5 = vld [vmem:[%s2515_s5 + $0xc4] ss:$8 sps:$4 sm:$0xff]  }
  0x10   :  { %1727 = vmatpush3.bf16.msra.mxu0 %v1726_v15  ;;  %v1823_v1 = vld [vmem:[%s2515_s5 + $0xb0] ss:$8 sps:$4 sm:$0xff]  }
  0x11   :  { %1728 = vmatprep.subr.bf16.mxu0 %v1924_v0 }
  0x14   :  { %1730 = vmatpush3.bf16.msra.mxu0 %v1729_v16 }
  0x15   :  { %1672 = vmatprep.subr.mxu0 %v1926_v4 }
  0x18   :  { %1673 = vmatpush3.msk.msra.mxu0 %vm61_vm1, %v56_v17 }
  0x19   :  { %1675 = vmatmul.mubr.msk.f32.vlgmr.msra.gmra.mrb[0].mxu0 %vm57_vm2, %v45_v19  ;;  %318 = vmatprep.subr.bf16.mxu0 %v1756_v18 }
  0x1a   :  { %319 = vmatpush1.bf16.msra.mxu0 %v1754_v20  ;;  %350 = vmatprep.mubr.bf16.mxu0 %v1928_v38 }
  0x1b   :  { %320 = vmatprep.subr.bf16.mxu0 %v1759_v21 }
  0x1e   :  { %321 = vmatpush1.bf16.msra.mxu0 %v1757_v22 }
  0x1f   :  { %322 = vmatprep.subr.bf16.mxu0 %v1762_v23 }
  0x22   :  { %323 = vmatpush1.bf16.msra.mxu0 %v1760_v24 }
  0x23   :  { %324 = vmatprep.subr.bf16.mxu0 %v1765_v25 }
  0x26   :  { %325 = vmatpush1.bf16.msra.mxu0 %v1763_v26 }
  0x27   :  { %326 = vmatprep.subr.bf16.mxu0 %v1768_v27  ;;  %v1788_v27 = vld [vmem:[%s2515_s5 + $0x4] ss:$8 sps:$4 sm:$0xff]  }
  0x28   :  { %885 = vmatprep.subr.bf16.mxu1 %v1788_v27 }
  0x2a   :  { %327 = vmatpush1.bf16.msra.mxu0 %v1766_v28  ;;  %v1790_v28 = vld [vmem:[%s2515_s5] ss:$8 sps:$4 sm:$0xff]  }
  0x2b   :  { %328 = vmatprep.subr.bf16.mxu0 %v310_v35  ;;  %886 = vmatpush1.bf16.msra.mxu1 %v1790_v28  ;;  %v1800_v35 = vld [vmem:[%s2515_s5 + $0x44] ss:$8 sps:$4 sm:$0xff]  }
  0x2c   :  { %887 = vmatprep.subr.bf16.mxu1 %v1791_v29 }
  0x2e   :  { %329 = vmatpush1.bf16.msra.mxu0 %v307_v36  ;;  %v1802_v36 = vld [vmem:[%s2515_s5 + $0x40] ss:$8 sps:$4 sm:$0xff]  }
  0x2f   :  { %359 = vmatprep.subr.bf16.mxu0 %v1773_v37  ;;  %888 = vmatpush1.bf16.msra.mxu1 %v1793_v30  ;;  %v1803_v37 = vld [vmem:[%s2515_s5 + $0x54] ss:$8 sps:$4 sm:$0xff]  }
  0x30   :  { %889 = vmatprep.subr.bf16.mxu1 %v1794_v31 }
  0x33   :  { %890 = vmatpush1.bf16.msra.mxu1 %v1796_v32 }
  0x34   :  { %891 = vmatprep.subr.bf16.mxu1 %v1797_v33 }
  0x37   :  { %892 = vmatpush1.bf16.msra.mxu1 %v1799_v34 }
  0x38   :  { %893 = vmatprep.subr.bf16.mxu1 %v1800_v35 }
  0x3b   :  { %894 = vmatpush1.bf16.msra.mxu1 %v1802_v36 }
  0x3c   :  { %895 = vmatprep.subr.bf16.mxu1 %v1803_v37 }
  0xec   :  { %v131_v39 = vpop.f32.mrb[0].mxu0 }
  0xed   :  { %v135_v41 = vadd.f32 %v131_v39, %v45_v19  ;;  %v1676_v42 = vpop.f32.mrb[1].mxu0  ;;  %v1806_v39 = vld [vmem:[%s2515_s5 + $0x64] ss:$8 sps:$4 sm:$0xff]  }
  0xee   :  { %v1811_v42 = vld [vmem:[%s2515_s5 + $0x70] ss:$8 sps:$4 sm:$0xff]  }
  0xef   :  { %v143_v43 = vadd.f32 %v1473_v40, %v135_v41  ;;  %v1808_v40 = vld [vmem:[%s2515_s5 + $0x60] ss:$8 sps:$4 sm:$0xff]   ;;  %v1809_v41 = vld [vmem:[%s2515_s5 + $0x74] ss:$8 sps:$4 sm:$0xff]  }
  0xf1   :  { %v144_v45 = vpack.c.bf16 %v143_v43, %v143_v43  ;;  %v1812_v43 = vld [vmem:[%s2515_s5 + $0x84] ss:$8 sps:$4 sm:$0xff]  }
  0xf3   :  { %1498 = vmatmul.mubr.msk.bf16.vlgmr.msra.gmra.mrb[4].mxu0 %vm57_vm2, %v144_v45 }
  0xf4   :  { %360 = vmatpush1.bf16.msra.mxu0 %v1771_v44  ;;  %391 = vmatprep.mubr.bf16.mxu0 %v1928_v38  ;;  %v1805_v38 = vld [vmem:[%s2515_s5 + $0x50] ss:$8 sps:$4 sm:$0xff]   ;;  %v1814_v44 = vld [vmem:[%s2515_s5 + $0x80] ss:$8 sps:$4 sm:$0xff]  }
  0xf5   :  { %361 = vmatprep.subr.bf16.mxu0 %v1776_v46  ;;  %896 = vmatpush1.bf16.msra.mxu1 %v1805_v38  ;;  %v1817_v46 = vld [vmem:[%s2515_s5 + $0x90] ss:$8 sps:$4 sm:$0xff]  }
  0xf6   :  { %897 = vmatprep.subr.bf16.mxu1 %v1806_v39 }
  0xf8   :  { %362 = vmatpush1.bf16.msra.mxu0 %v1774_v47  ;;  %v1818_v47 = vld [vmem:[%s2515_s5 + $0xa4] ss:$8 sps:$4 sm:$0xff]  }
  0xf9   :  { %363 = vmatprep.subr.bf16.mxu0 %v1779_v48  ;;  %898 = vmatpush1.bf16.msra.mxu1 %v1808_v40 }
  0xfa   :  { %899 = vmatprep.subr.bf16.mxu1 %v1809_v41 }
  0xfc   :  { %364 = vmatpush1.bf16.msra.mxu0 %v1777_v49 }
  0xfd   :  { %365 = vmatprep.subr.bf16.mxu0 %v1782_v50  ;;  %900 = vmatpush1.bf16.msra.mxu1 %v1811_v42 }
  0xfe   :  { %901 = vmatprep.subr.bf16.mxu1 %v1812_v43 }
 0x100   :  { %366 = vmatpush1.bf16.msra.mxu0 %v1780_v52 }
 0x101   :  { %367 = vmatprep.subr.bf16.mxu0 %v1785_v53  ;;  %902 = vmatpush1.bf16.msra.mxu1 %v1814_v44 }
 0x104   :  { %368 = vmatpush1.bf16.msra.mxu0 %v1783_v55 }
 0x105   :  { %369 = vmatprep.subr.bf16.mxu0 %v316_v57 }
 0x108   :  { %370 = vmatpush1.bf16.msra.mxu0 %v313_v58 }
 0x10b   :  { %1499 = vmatmul.mubr.msk.bf16.vlgmr.msra.gmra.mrb[8].mxu0 %vm57_vm2, %v144_v45  ;;  %v1815_v45 = vld [vmem:[%s2515_s5 + $0x94] ss:$8 sps:$4 sm:$0xff]  }
 0x10c   :  { %903 = vmatprep.subr.bf16.mxu1 %v1815_v45  ;;  %v1839_v45 = vld [vmem:[%s2515_s5 + $0x110] ss:$8 sps:$4 sm:$0xff]  }
 0x10d   :  { %904 = vmatpush1.bf16.msra.mxu1 %v1817_v46  ;;  %v1844_v46 = vld [vmem:[%s2515_s5 + $0x124] ss:$8 sps:$4 sm:$0xff]  }
 0x10e   :  { %905 = vmatprep.subr.bf16.mxu1 %v1818_v47  ;;  %v1842_v47 = vld [vmem:[%s2515_s5 + $0x120] ss:$8 sps:$4 sm:$0xff]  }
 0x1c6   :  { %v352_v59 = vpop.f32.mrb[4].mxu0 }
 0x1c7   :  { %v354_v60 = vpop.f32.mrb[5].mxu0  ;;  %v2129_v10 = vadd.f32 %v352_v59, %v172_v6  ;;  %v1826_v6 = vld [vmem:[%s2515_s5 + $0xc0] ss:$8 sps:$4 sm:$0xff]  }
 0x1c8   :  { %v356_v61 = vpop.f32.mrb[6].mxu0  ;;  %v2131_v11 = vadd.f32 %v354_v60, %v176_v7  ;;  %v1827_v7 = vld [vmem:[%s2515_s5 + $0xd4] ss:$8 sps:$4 sm:$0xff]  }
 0x1c9   :  { %v357_v63 = vpop.f32.mrb[7].mxu0  ;;  %v400_v14 = vmax.f32 %v2129_v10, 0.0  ;;  %v1820_v61 = vld [vmem:[%s2515_s5 + $0xa0] ss:$8 sps:$4 sm:$0xff]   ;;  %v1829_v10 = vld [vmem:[%s2515_s5 + $0xd0] ss:$8 sps:$4 sm:$0xff]  }
 0x1ca   :  { %v401_v15 = vmax.f32 %v2131_v11, 0.0  ;;  %906 = vmatpush1.bf16.msra.mxu1 %v1820_v61  ;;  %v1821_v63 = vld [vmem:[%s2515_s5 + $0xb4] ss:$8 sps:$4 sm:$0xff]   ;;  %v1830_v11 = vld [vmem:[%s2515_s5 + $0xe4] ss:$8 sps:$4 sm:$0xff]  }
 0x1cb   :  { %907 = vmatprep.subr.bf16.mxu1 %v1821_v63  ;;  %v1863_v61 = vld [vmem:[%s2515_s5 + $0x190] ss:$8 sps:$4 sm:$0xff]   ;;  %v1868_v63 = vld [vmem:[%s2515_s5 + $0x1a4] ss:$8 sps:$4 sm:$0xff]  }
 0x1cc   :  { %v404_v21 = vadd.f32 %v401_v15, %v400_v14 }
 0x1ce   :  { %908 = vmatpush1.bf16.msra.mxu1 %v1823_v1  ;;  %v1866_v1 = vld [vmem:[%s2515_s5 + $0x1a0] ss:$8 sps:$4 sm:$0xff]  }
 0x1cf   :  { %909 = vmatprep.subr.bf16.mxu1 %v1824_v5  ;;  %v1871_v5 = vld [vmem:[%s2515_s5 + $0x1b4] ss:$8 sps:$4 sm:$0xff]  }
 0x1d2   :  { %910 = vmatpush1.bf16.msra.mxu1 %v1826_v6  ;;  %v1869_v6 = vld [vmem:[%s2515_s5 + $0x1b0] ss:$8 sps:$4 sm:$0xff]  }
 0x1d3   :  { %911 = vmatprep.subr.bf16.mxu1 %v1827_v7  ;;  %v1874_v7 = vld [vmem:[%s2515_s5 + $0x1c4] ss:$8 sps:$4 sm:$0xff]  }
 0x1d6   :  { %912 = vmatpush1.bf16.msra.mxu1 %v1829_v10  ;;  %v1872_v10 = vld [vmem:[%s2515_s5 + $0x1c0] ss:$8 sps:$4 sm:$0xff]  }
 0x1d7   :  { %913 = vmatprep.subr.bf16.mxu1 %v1830_v11  ;;  %v1877_v11 = vld [vmem:[%s2515_s5 + $0x1d4] ss:$8 sps:$4 sm:$0xff]  }
 0x1de   :  { %v393_v16 = vpop.f32.mrb[8].mxu0 }
 0x1df   :  { %v394_v17 = vadd.f32 %v393_v16, %v180_v12  ;;  %v395_v18 = vpop.f32.mrb[9].mxu0  ;;  %v1832_v12 = vld [vmem:[%s2515_s5 + $0xe0] ss:$8 sps:$4 sm:$0xff]  }
 0x1e0   :  { %v396_v19 = vadd.f32 %v395_v18, %v184_v13  ;;  %v397_v20 = vpop.f32.mrb[10].mxu0  ;;  %v1833_v13 = vld [vmem:[%s2515_s5 + $0xf4] ss:$8 sps:$4 sm:$0xff]   ;;  %914 = vmatpush1.bf16.msra.mxu1 %v1832_v12  ;;  %v1875_v12 = vld [vmem:[%s2515_s5 + $0x1d0] ss:$8 sps:$4 sm:$0xff]  }
 0x1e1   :  { %v402_v22 = vmax.f32 %v394_v17, 0.0  ;;  %v398_v23 = vpop.f32.mrb[11].mxu0  ;;  %915 = vmatprep.subr.bf16.mxu1 %v1833_v13  ;;  %v1501_v20 = vld [vmem:[%s2514_s4 + $0x2] ss:$4 sm:$0xf] }
 0x1e2   :  { %v403_v24 = vmax.f32 %v396_v19, 0.0  ;;  %v1500_v19 = vld [vmem:[%s2514_s4 + $0x1] ss:$4 sm:$0xf]  ;;  %v464_v27 = vrot.slane %v1501_v20, %v2116_v2  ;;  %v476_v28 = vrot.slane %v1501_v20, %v2127_v9  ;;  %v472_v29 = vrot.slane %v1501_v20, %v2125_v8 }
 0x1e3   :  { %v405_v25 = vadd.f32 %v404_v21, %v402_v22  ;;  %v441_v21 = vrot.slane %v1500_v19, %v2118_v3  ;;  %v449_v23 = vrot.slane %v1500_v19, %v2127_v9  ;;  %v1836_v9 = vld [vmem:[%s2515_s5 + $0x100] ss:$8 sps:$4 sm:$0xff]   ;;  %v1880_v13 = vld [vmem:[%s2515_s5 + $0x1e4] ss:$8 sps:$4 sm:$0xff]  }
 0x1e5   :  { %v406_v26 = vadd.f32 %v405_v25, %v403_v24 }
 0x1e7   :  { %407 = vadd.xlane.f32.xlu0 %v406_v26  ;;  %v468_v26 = vrot.slane %v1501_v20, %v2118_v3 }
 0x274   :  { %v408_v48 = vpop.xlane.xlu0 %407 }
 0x275   :  { %v410_v49 = vmul.f32 0.001953125, %v408_v48  ;;  %v1847_v48 = vld [vmem:[%s2515_s5 + $0x134] ss:$8 sps:$4 sm:$0xff]  }
 0x277   :  { %v411_v50 = vsub.f32 %v400_v14, %v410_v49  ;;  %v412_v51 = vsub.f32 %v401_v15, %v410_v49  ;;  %v413_v52 = vsub.f32 %v402_v22, %v410_v49  ;;  %v414_v53 = vsub.f32 %v403_v24, %v410_v49  ;;  %v1835_v14 = vld [vmem:[%s2515_s5 + $0xf0] ss:$8 sps:$4 sm:$0xff]   ;;  %v1838_v15 = vld [vmem:[%s2515_s5 + $0x104] ss:$8 sps:$4 sm:$0xff]  }
 0x278   :  { %916 = vmatpush1.bf16.msra.mxu1 %v1835_v14  ;;  %v437_v22 = vrot.slane %v1500_v19, %v2116_v2  ;;  %v445_v24 = vrot.slane %v1500_v19, %v2125_v8  ;;  %v1841_v8 = vld [vmem:[%s2515_s5 + $0x114] ss:$8 sps:$4 sm:$0xff]   ;;  %v1845_v49 = vld [vmem:[%s2515_s5 + $0x130] ss:$8 sps:$4 sm:$0xff]   ;;  %v1878_v14 = vld [vmem:[%s2515_s5 + $0x1e0] ss:$8 sps:$4 sm:$0xff]  }
 0x279   :  { %v415_v54 = vmul.f32 %v411_v50, %v411_v50  ;;  %v416_v55 = vmul.f32 %v412_v51, %v412_v51  ;;  %v417_v56 = vmul.f32 %v413_v52, %v413_v52  ;;  %v418_v58 = vmul.f32 %v414_v53, %v414_v53  ;;  %926 = vmatprep.subr.bf16.mxu1 %v1838_v15  ;;  %v1883_v15 = vld [vmem:[%s2515_s5 + $0x1f4] ss:$8 sps:$4 sm:$0xff]  }
 0x27b   :  { %v419_v57 = vadd.f32 %v416_v55, %v415_v54  ;;  %v1856_v54 = vld [vmem:[%s2515_s5 + $0x164] ss:$8 sps:$4 sm:$0xff]   ;;  %v1854_v55 = vld [vmem:[%s2515_s5 + $0x160] ss:$8 sps:$4 sm:$0xff]  }
 0x27d   :  { %v420_v59 = vadd.f32 %v419_v57, %v417_v56  ;;  %v1859_v56 = vld [vmem:[%s2515_s5 + $0x174] ss:$8 sps:$4 sm:$0xff]   ;;  %v1857_v57 = vld [vmem:[%s2515_s5 + $0x170] ss:$8 sps:$4 sm:$0xff]  }
 0x27f   :  { %v421_v60 = vadd.f32 %v420_v59, %v418_v58  ;;  %v1862_v58 = vld [vmem:[%s2515_s5 + $0x184] ss:$8 sps:$4 sm:$0xff]   ;;  %v1860_v59 = vld [vmem:[%s2515_s5 + $0x180] ss:$8 sps:$4 sm:$0xff]  }
 0x281   :  { %422 = vadd.xlane.f32.xlu0 %v421_v60  ;;  %v1865_v60 = vld [vmem:[%s2515_s5 + $0x194] ss:$8 sps:$4 sm:$0xff]  }
 0x30e   :  { %v423_v16 = vpop.xlane.xlu0 %422 }
 0x30f   :  { %v424_v17 = vmul.f32 0.001953125, %v423_v16  ;;  %v1881_v16 = vld [vmem:[%s2515_s5 + $0x1f0] ss:$8 sps:$4 sm:$0xff]  }
 0x311   :  { %v425_v18 = vadd.f32 1e-05, %v424_v17 }
 0x313   :  { %1908 = vrsqrt.f32 %v425_v18  ;;  %v553_v18 = vld [vmem:[%s2516_s6] ss:$4 sm:$0x3] }
 0x314   :  { %v558_v19 = vrot.slane %v553_v18, %v2116_v2  ;;  %v562_v20 = vrot.slane %v553_v18, %v2118_v3  ;;  %v1900_v18 = vld [vmem:[%s2519_s9] sm:$0xff]  }
 0x31d   :  { %v1909_v25 = vpop.eup %1908 }
 0x31e   :  { %v428_v30 = vmul.f32 %v1909_v25, %v412_v51  ;;  %v427_v31 = vmul.f32 %v1909_v25, %v411_v50  ;;  %v430_v32 = vmul.f32 %v1909_v25, %v414_v53  ;;  %v429_v33 = vmul.f32 %v1909_v25, %v413_v52  ;;  %v1850_v50 = vld [vmem:[%s2515_s5 + $0x144] ss:$8 sps:$4 sm:$0xff]   ;;  %v1848_v51 = vld [vmem:[%s2515_s5 + $0x140] ss:$8 sps:$4 sm:$0xff]   ;;  %v1853_v52 = vld [vmem:[%s2515_s5 + $0x154] ss:$8 sps:$4 sm:$0xff]  }
 0x31f   :  { %v1851_v53 = vld [vmem:[%s2515_s5 + $0x150] ss:$8 sps:$4 sm:$0xff]  }
 0x320   :  { %v455_v34 = vmul.f32 %v441_v21, %v428_v30  ;;  %v454_v35 = vmul.f32 %v437_v22, %v427_v31  ;;  %v457_v36 = vmul.f32 %v449_v23, %v430_v32  ;;  %v456_v37 = vmul.f32 %v445_v24, %v429_v33  ;;  %v1884_v30 = vld [vmem:[%s2517_s7 + $0x40] sm:$0xff]   ;;  %v1886_v32 = vld [vmem:[%s2517_s7 + $0x48] sm:$0xff]  }
 0x321   :  { %v1885_v31 = vld [vmem:[%s2517_s7] sm:$0xff]   ;;  %1612 = vmatprep.subr.bf16.mxu0 %v1884_v30  ;;  %v1887_v33 = vld [vmem:[%s2517_s7 + $0x8] sm:$0xff]  }
 0x322   :  { %v482_v38 = vadd.f32 %v468_v26, %v455_v34  ;;  %v481_v39 = vadd.f32 %v464_v27, %v454_v35  ;;  %v484_v40 = vadd.f32 %v476_v28, %v457_v36  ;;  %v2250_v41 = vadd.f32 %v472_v29, %v456_v37  ;;  %1613 = vmatpush3.bf16.msra.mxu0 %v1885_v31 }
 0x323   :  { %1614 = vmatprep.subr.bf16.mxu0 %v1886_v32 }
 0x324   :  { %v486_v42 = vpack.c.bf16 %v482_v38, %v482_v38  ;;  %v485_v43 = vpack.c.bf16 %v481_v39, %v481_v39  ;;  %v488_v44 = vpack.c.bf16 %v484_v40, %v484_v40  ;;  %v487_v17 = vpack.c.bf16 %v2250_v41, %v2250_v41  ;;  %v1888_v41 = vld [vmem:[%s2517_s7 + $0x50] sm:$0xff]  }
 0x326   :  { %917 = vmatprep.mubr.bf16.mxu1 %v486_v42  ;;  %1615 = vmatpush3.bf16.msra.mxu0 %v1887_v33  ;;  %v1889_v42 = vld [vmem:[%s2517_s7 + $0x10] sm:$0xff]  }
 0x327   :  { %918 = vmatmul.mubr.bf16.vlgmr.msra.gmra.mrb[0].mxu1 %v485_v43  ;;  %1616 = vmatprep.subr.bf16.mxu0 %v1888_v41  ;;  %v1891_v43 = vld [vmem:[%s2517_s7 + $0x18] sm:$0xff]  }
 0x328   :  { %927 = vmatpush1.bf16.msra.mxu1 %v1836_v9  ;;  %958 = vmatprep.mubr.bf16.mxu1 %v488_v44  ;;  %v1890_v9 = vld [vmem:[%s2517_s7 + $0x58] sm:$0xff]   ;;  %v1893_v44 = vld [vmem:[%s2517_s7 + $0x20] sm:$0xff]  }
 0x329   :  { %928 = vmatprep.subr.bf16.mxu1 %v1841_v8  ;;  %v1892_v8 = vld [vmem:[%s2517_s7 + $0x60] sm:$0xff]  }
 0x32a   :  { %1617 = vmatpush3.bf16.msra.mxu0 %v1889_v42 }
 0x32b   :  { %1618 = vmatprep.subr.bf16.mxu0 %v1890_v9 }
 0x32c   :  { %929 = vmatpush1.bf16.msra.mxu1 %v1839_v45  ;;  %v1894_v45 = vld [vmem:[%s2517_s7 + $0x68] sm:$0xff]  }
 0x32d   :  { %930 = vmatprep.subr.bf16.mxu1 %v1844_v46  ;;  %v1895_v46 = vld [vmem:[%s2517_s7 + $0x28] sm:$0xff]  }
 0x32e   :  { %1619 = vmatpush3.bf16.msra.mxu0 %v1891_v43 }
 0x32f   :  { %1620 = vmatprep.subr.bf16.mxu0 %v1892_v8 }
 0x330   :  { %931 = vmatpush1.bf16.msra.mxu1 %v1842_v47  ;;  %v1896_v47 = vld [vmem:[%s2517_s7 + $0x70] sm:$0xff]  }
 0x331   :  { %932 = vmatprep.subr.bf16.mxu1 %v1847_v48  ;;  %v1897_v48 = vld [vmem:[%s2517_s7 + $0x30] sm:$0xff]  }
 0x332   :  { %1621 = vmatpush3.bf16.msra.mxu0 %v1893_v44 }
 0x333   :  { %1622 = vmatprep.subr.bf16.mxu0 %v1894_v45 }
 0x334   :  { %933 = vmatpush1.bf16.msra.mxu1 %v1845_v49  ;;  %v1898_v49 = vld [vmem:[%s2517_s7 + $0x78] sm:$0xff]  }
 0x335   :  { %934 = vmatprep.subr.bf16.mxu1 %v1850_v50  ;;  %v1899_v50 = vld [vmem:[%s2517_s7 + $0x38] sm:$0xff]  }
 0x336   :  { %1623 = vmatpush3.bf16.msra.mxu0 %v1895_v46 }
 0x337   :  { %1624 = vmatprep.subr.bf16.mxu0 %v1896_v47 }
 0x338   :  { %935 = vmatpush1.bf16.msra.mxu1 %v1848_v51 }
 0x339   :  { %936 = vmatprep.subr.bf16.mxu1 %v1853_v52 }
 0x33a   :  { %1625 = vmatpush3.bf16.msra.mxu0 %v1897_v48 }
 0x33b   :  { %1626 = vmatprep.subr.bf16.mxu0 %v1898_v49 }
 0x33c   :  { %937 = vmatpush1.bf16.msra.mxu1 %v1851_v53 }
 0x33d   :  { %938 = vmatprep.subr.bf16.mxu1 %v1856_v54  ;;  %v1566_v54 = vld [vmem:[%s2516_s6 + $0x1] ss:$4 sm:$0x3] }
 0x33e   :  { %1627 = vmatpush3.bf16.msra.mxu0 %v1899_v50  ;;  %v1354_v50 = vld [vmem:[%s2521_s11] sm:$0xff] }
 0x33f   :  { %1677 = vmatprep.subr.bf16.mxu0 %v1926_v4 }
 0x340   :  { %939 = vmatpush1.bf16.msra.mxu1 %v1854_v55  ;;  %v1567_v55 = vld [vmem:[%s2516_s6 + $0x2] ss:$4 sm:$0x3] }
 0x341   :  { %940 = vmatprep.subr.bf16.mxu1 %v1859_v56  ;;  %v992_v56 = vrot.slane %v1566_v54, %v2116_v2 }
 0x344   :  { %941 = vmatpush1.bf16.msra.mxu1 %v1857_v57  ;;  %v996_v57 = vrot.slane %v1566_v54, %v2118_v3  ;;  %v1357_v54 = vld [vmem:[%s2521_s11 + $0x18] sm:$0xff] }
 0x345   :  { %942 = vmatprep.subr.bf16.mxu1 %v1862_v58 }
 0x348   :  { %943 = vmatpush1.bf16.msra.mxu1 %v1860_v59 }
 0x349   :  { %944 = vmatprep.subr.bf16.mxu1 %v1865_v60  ;;  %v1007_v60 = vrot.slane %v1567_v55, %v2116_v2  ;;  %v1568_v2 = vld [vmem:[%s2518_s8] ss:$0 sm:$0xff] }
 0x34c   :  { %945 = vmatpush1.bf16.msra.mxu1 %v1863_v61  ;;  %v1011_v61 = vrot.slane %v1567_v55, %v2118_v3 }
 0x34d   :  { %946 = vmatprep.subr.bf16.mxu1 %v1868_v63 }
 0x350   :  { %947 = vmatpush1.bf16.msra.mxu1 %v1866_v1 }
 0x351   :  { %948 = vmatprep.subr.bf16.mxu1 %v1871_v5 }
 0x354   :  { %949 = vmatpush1.bf16.msra.mxu1 %v1869_v6 }
 0x355   :  { %950 = vmatprep.subr.bf16.mxu1 %v1874_v7 }
 0x358   :  { %951 = vmatpush1.bf16.msra.mxu1 %v1872_v10 }
 0x359   :  { %952 = vmatprep.subr.bf16.mxu1 %v1877_v11 }
 0x35c   :  { %953 = vmatpush1.bf16.msra.mxu1 %v1875_v12 }
 0x35d   :  { %954 = vmatprep.subr.bf16.mxu1 %v1880_v13 }
 0x360   :  { %955 = vmatpush1.bf16.msra.mxu1 %v1878_v14 }
 0x361   :  { %956 = vmatprep.subr.bf16.mxu1 %v1883_v15 }
 0x364   :  { %957 = vmatpush1.bf16.msra.mxu1 %v1881_v16 }
 0x365   :  { %1731 = vmatprep.subr.bf16.mxu1 %v1924_v0 }
 0x367   :  { %959 = vmatmul.mubr.bf16.vlgmr.msra.gmra.mrb[0].mxu1 %v487_v17 }
 0x368   :  { %1713 = vmatprep.mubr.msk.f32.mxu1 %vm1925_vm0, %v1926_v4 }
 0x43a   :  { %v960_v21 = vpop.f32.mrb[0].mxu1 }
 0x43b   :  { %v1743_v22 = vadd.f32 %v960_v21, %v558_v19  ;;  %v962_v23 = vpop.f32.mrb[1].mxu1  ;;  %v1901_v19 = vld [vmem:[%s2519_s9 + $0x8] sm:$0xff]  }
 0x43c   :  { %v1744_v24 = vadd.f32 %v962_v23, %v562_v20  ;;  %v964_v25 = vpop.f32.mrb[2].mxu1 }
 0x43d   :  { %v967_v26 = vmax.f32 %v1743_v22, 0.0  ;;  %v965_v27 = vpop.f32.mrb[3].mxu1  ;;  %v1903_v25 = vld [vmem:[%s2519_s9 + $0x18] sm:$0xff]  }
 0x43e   :  { %v968_v28 = vmax.f32 %v1744_v24, 0.0  ;;  %v1902_v24 = vld [vmem:[%s2519_s9 + $0x10] sm:$0xff]   ;;  %v1905_v27 = vld [vmem:[%s2519_s9 + $0x28] sm:$0xff]  }
 0x440   :  { %v969_v29 = vadd.f32 %v968_v28, %v967_v26 }
 0x442   :  { %970 = vadd.xlane.f32.xlu1 %v969_v29  ;;  %v1907_v29 = vld [vmem:[%s2519_s9 + $0x38] sm:$0xff]  }
 0x4cf   :  { %v971_v34 = vpop.xlane.xlu1 %970 }
 0x4d0   :  { %v973_v35 = vmul.f32 0.00390625, %v971_v34  ;;  %v1585_v34 = vld [vmem:[%s2518_s8 + $0x1] ss:$0 sm:$0xff] }
 0x4d2   :  { %v974_v36 = vsub.f32 %v967_v26, %v973_v35  ;;  %v975_v37 = vsub.f32 %v968_v28, %v973_v35  ;;  %v1904_v26 = vld [vmem:[%s2519_s9 + $0x20] sm:$0xff]   ;;  %v1906_v28 = vld [vmem:[%s2519_s9 + $0x30] sm:$0xff]  }
 0x4d4   :  { %v976_v38 = vmul.f32 %v974_v36, %v974_v36  ;;  %v977_v39 = vmul.f32 %v975_v37, %v975_v37 }
 0x4d6   :  { %v978_v40 = vadd.f32 %v977_v39, %v976_v38 }
 0x4d8   :  { %979 = vadd.xlane.f32.xlu1 %v978_v40 }
 0x565   :  { %v980_v51 = vpop.xlane.xlu1 %979 }
 0x566   :  { %v981_v52 = vmul.f32 0.00390625, %v980_v51  ;;  %v1355_v51 = vld [vmem:[%s2521_s11 + $0x8] sm:$0xff] }
 0x568   :  { %v982_v53 = vadd.f32 1e-05, %v981_v52  ;;  %v1732_v52 = vpack.c.bf16 %v1355_v51, %v1354_v50 }
 0x56a   :  { %1910 = vrsqrt.f32 %v982_v53  ;;  %1733 = vmatpush3.bf16.msra.mxu1 %v1732_v52  ;;  %v1356_v53 = vld [vmem:[%s2521_s11 + $0x10] sm:$0xff] }
 0x56b   :  { %1734 = vmatprep.subr.bf16.mxu1 %v1924_v0  ;;  %v1735_v55 = vpack.c.bf16 %v1357_v54, %v1356_v53 }
 0x56e   :  { %1736 = vmatpush3.bf16.msra.mxu1 %v1735_v55 }
 0x56f   :  { %1737 = vmatprep.subr.bf16.mxu1 %v1924_v0 }
 0x574   :  { %v1911_v58 = vpop.eup %1910 }
 0x575   :  { %v985_v59 = vmul.f32 %v1911_v58, %v975_v37  ;;  %v984_v63 = vmul.f32 %v1911_v58, %v974_v36  ;;  %v1586_v36 = vld [vmem:[%s2518_s8 + $0x2] ss:$0 sm:$0xff] }
 0x577   :  { %v1000_v1 = vmul.f32 %v996_v57, %v985_v59  ;;  %v999_v5 = vmul.f32 %v992_v56, %v984_v63  ;;  %v1358_v56 = vld [vmem:[%s2521_s11 + $0x20] sm:$0xff]  ;;  %v1359_v57 = vld [vmem:[%s2521_s11 + $0x28] sm:$0xff]  ;;  %v1360_v59 = vld [vmem:[%s2521_s11 + $0x30] sm:$0xff] }
 0x578   :  { %v1738_v58 = vpack.c.bf16 %v1359_v57, %v1358_v56 }
 0x579   :  { %v1015_v6 = vadd.f32 %v1011_v61, %v1000_v1  ;;  %v1014_v7 = vadd.f32 %v1007_v60, %v999_v5  ;;  %v1361_v60 = vld [vmem:[%s2521_s11 + $0x38] sm:$0xff] }
 0x57a   :  { %1739 = vmatpush3.bf16.msra.mxu1 %v1738_v58  ;;  %v1741_v61 = vpack.c.bf16 %v1361_v60, %v1360_v59 }
 0x57b   :  { %v1017_v10 = vpack.c.bf16 %v1015_v6, %v1015_v6  ;;  %v1016_v11 = vpack.c.bf16 %v1014_v7, %v1014_v7  ;;  %1740 = vmatprep.subr.bf16.mxu1 %v1924_v0  ;;  %v1596_v7 = vld [vmem:[%s2520_s10 + $0x1] ss:$0 sm:$0xff] }
 0x57d   :  { %1183 = vmatprep.mubr.bf16.mxu0 %v1017_v10  ;;  %v1597_v10 = vld [vmem:[%s2520_s10 + $0x2] ss:$0 sm:$0xff] }
 0x57e   :  { %1184 = vmatmul.mubr.bf16.vlgmr.msra.gmra.mrb[12].mxu0 %v1016_v11  ;;  %1742 = vmatpush3.bf16.msra.mxu1 %v1741_v61 }
 0x57f   :  { %1693 = vmatprep.mubr.msk.bf16.mxu0 %vm1925_vm0, %v1926_v4  ;;  %1678 = vmatpush3.bf16.msra.mxu0 %v1900_v18 }
 0x580   :  { %1679 = vmatprep.subr.bf16.mxu0 %v1926_v4 }
 0x583   :  { %1680 = vmatpush3.bf16.msra.mxu0 %v1901_v19 }
 0x584   :  { %1681 = vmatprep.subr.bf16.mxu0 %v1926_v4 }
 0x587   :  { %1682 = vmatpush3.bf16.msra.mxu0 %v1902_v24 }
 0x588   :  { %1683 = vmatprep.subr.bf16.mxu0 %v1926_v4 }
 0x58b   :  { %1684 = vmatpush3.bf16.msra.mxu0 %v1903_v25 }
 0x58c   :  { %1685 = vmatprep.subr.bf16.mxu0 %v1926_v4 }
 0x58f   :  { %1686 = vmatpush3.bf16.msra.mxu0 %v1904_v26 }
 0x590   :  { %1687 = vmatprep.subr.bf16.mxu0 %v1926_v4 }
 0x593   :  { %1688 = vmatpush3.bf16.msra.mxu0 %v1905_v27 }
 0x594   :  { %1689 = vmatprep.subr.bf16.mxu0 %v1926_v4 }
 0x597   :  { %1690 = vmatpush3.bf16.msra.mxu0 %v1906_v28 }
 0x598   :  { %1691 = vmatprep.subr.bf16.mxu0 %v1926_v4  ;;  %v1587_v4 = vld [vmem:[%s2520_s10] ss:$0 sm:$0xff] }
 0x59b   :  { %1692 = vmatpush3.bf16.msra.mxu0 %v1907_v29 }
 0x651   :  { %v1628_v12 = vpop.f32.mrb[12].mxu0 }
 0x652   :  { %v1629_v13 = vpop.f32.mrb[13].mxu0 }
 0x653   :  { %v1630_v14 = vadd.f32 %v1629_v13, %v1628_v12  ;;  %v1631_v3 = vpop.f32.mrb[14].mxu0  ;;  %v1443_v13 = vand.u32 127, %v169_v62 }
 0x654   :  { %v1632_v15 = vpop.f32.mrb[15].mxu0 }
 0x655   :  { %v1186_v16 = vadd.f32 %v1630_v14, %v1568_v2  ;;  %vm1444_vm6 = vcmp.ge.s32.totalorder %v1443_v13, 65  ;;  %vm1445_vm7 = vcmp.lt.s32.totalorder %v1443_v13, 70  ;;  %v1598_v2 = vld [vmem:[%s2522_s12] ss:$0 sm:$0xff]  ;;  %vm1463_vm9 = vcmp.eq.s32.totalorder %v1443_v13, 70 }
 0x656   :  { %vm2499_vm8 = vmand %vm1444_vm6, %vm1445_vm7 }
 0x657   :  { %v1191_v17 = vmax.f32 %v1186_v16, 0.0 }
 0x659   :  { %1192 = vadd.xlane.f32.xlu0 %v1191_v17 }
 0x6e6   :  { %v1193_v20 = vpop.xlane.xlu0 %1192 }
 0x6e7   :  { %v1195_v21 = vmul.f32 0.0078125, %v1193_v20 }
 0x6e9   :  { %v1196_v22 = vsub.f32 %v1191_v17, %v1195_v21 }
 0x6eb   :  { %v1197_v23 = vmul.f32 %v1196_v22, %v1196_v22 }
 0x6ed   :  { %1198 = vadd.xlane.f32.xlu1 %v1197_v23 }
 0x77a   :  { %v1199_v30 = vpop.xlane.xlu1 %1198 }
 0x77b   :  { %v1200_v31 = vmul.f32 0.0078125, %v1199_v30 }
 0x77d   :  { %v1201_v32 = vadd.f32 1e-05, %v1200_v31 }
 0x77f   :  { %1912 = vrsqrt.f32 %v1201_v32 }
 0x789   :  { %v1913_v33 = vpop.eup %1912 }
 0x78a   :  { %v1203_v35 = vmul.f32 %v1913_v33, %v1196_v22 }
 0x78c   :  { %v1209_v37 = vmul.f32 %v1585_v34, %v1203_v35 }
 0x78e   :  { %v1215_v38 = vadd.f32 %v1586_v36, %v1209_v37 }
 0x790   :  { %v1216_v39 = vpack.c.bf16 %v1215_v38, %v1215_v38 }
 0x792   :  { %1694 = vmatmul.mubr.bf16.vlgmr.msra.gmra.mrb[16].mxu0 %v1216_v39 }
 0x865   :  { %v1320_v40 = vpop.f32.mrb[16].mxu0 }
 0x866   :  { %v1321_v41 = vadd.f32 %v1587_v4, %v1320_v40  ;;  %v1695_v42 = vpop.f32.mrb[17].mxu0 }
 0x867   :  { %v1323_v9 = vpop.f32.mrb[18].mxu0 }
 0x868   :  { %v1326_v43 = vmax.f32 %v1321_v41, 0.0  ;;  %v1696_v8 = vpop.f32.mrb[19].mxu0 }
 0x86a   :  { %v1328_v44 = vsel %vm1327_vm5, %v1326_v43, 0.0 }
 0x86b   :  { %1329 = vadd.xlane.f32.xlu0 %v1328_v44 }
 0x8f8   :  { %v1330_v45 = vpop.xlane.xlu0 %1329 }
 0x8f9   :  { %v1332_v46 = vmul.f32 0.015625, %v1330_v45 }
 0x8fb   :  { %v1333_v47 = vsub.f32 %v1326_v43, %v1332_v46 }
 0x8fd   :  { %v1334_v48 = vmul.f32 %v1333_v47, %v1333_v47 }
 0x8ff   :  { %v1335_v49 = vsel %vm1327_vm5, %v1334_v48, 0.0 }
 0x900   :  { %1336 = vadd.xlane.f32.xlu1 %v1335_v49 }
 0x98d   :  { %v1337_v63 = vpop.xlane.xlu1 %1336 }
 0x98e   :  { %v1338_v1 = vmul.f32 0.015625, %v1337_v63 }
 0x990   :  { %v1339_v5 = vadd.f32 1e-05, %v1338_v1 }
 0x992   :  { %1914 = vrsqrt.f32 %v1339_v5 }
 0x99c   :  { %v1915_v6 = vpop.eup %1914 }
 0x99d   :  { %v1341_v0 = vmul.f32 %v1915_v6, %v1333_v47 }
 0x99f   :  { %v1347_v11 = vmul.f32 %v1596_v7, %v1341_v0 }
 0x9a1   :  { %v1353_v12 = vadd.f32 %v1597_v10, %v1347_v11 }
 0x9a3   :  { %1714 = vmatmul.mubr.msk.f32.vlgmr.msra.gmra.mrb[4].mxu1 %vm1327_vm5, %v1353_v12 }
 0xa76   :  { %v1438_v14 = vpop.f32.mrb[4].mxu1 }
 0xa77   :  { %v1439_v15 = vadd.f32 %v1598_v2, %v1438_v14  ;;  %v1715_v16 = vpop.f32.mrb[5].mxu1 }
 0xa79   :  { %v1457_v17 = vsub.f32 0.0, %v1439_v15  ;;  %v1447_v18 = vsel %vm2499_vm8, %v1439_v15, -inf }
 0xa7a   :  { %1448 = vmax.xlane.f32.xlu0 %v1447_v18 }
 0xa7b   :  { %v1458_v19 = vmul.f32 1.442695, %v1457_v17 }
 0xa7d   :  { %1916 = vpow2.f32 %v1458_v19 }
 0xa87   :  { %v1917_v62 = vpop.eup %1916 }
 0xa88   :  { %v1460_v20 = vadd.f32 1.0, %v1917_v62 }
 0xa8a   :  { %1918 = vrcp.f32 %v1460_v20 }
 0xa94   :  { %v1919_v21 = vpop.eup %1918 }
 0xa95   :  { %v1464_v22 = vsel %vm1463_vm9, %v1919_v21, %v1439_v15 }
 0xb07   :  { %v1449_v23 = vpop.xlane.xlu0 %1448 }
 0xb08   :  { %v1450_v24 = vsub.f32 %v1447_v18, %v1449_v23 }
 0xb0a   :  { %v1451_v25 = vmul.f32 1.442695, %v1450_v24 }
 0xb0c   :  { %1920 = vpow2.f32 %v1451_v25 }
 0xb16   :  { %v1921_v26 = vpop.eup %1920 }
 0xb17   :  { %1453 = vadd.xlane.f32.xlu1 %v1921_v26 }
 0xba4   :  { %v1454_v27 = vpop.xlane.xlu1 %1453 }
 0xba5   :  { %1922 = vrcp.f32 %v1454_v27 }
 0xbaf   :  { %v1923_v28 = vpop.eup %1922 }
 0xbb0   :  { %v1456_v29 = vmul.f32 %v1923_v28, %v1921_v26 }
 0xbb2   :  { %v1465_v30 = vsel %vm2499_vm8, %v1456_v29, %v1464_v22 }
 0xbb3   :  { %1466 = vst [vmem:[%s2523_s13] sm:$0xff] %v1465_v30 }

</bundles_post_ra>
